<compile_context>
chip_gen: v5e
topology: v5e:2x2
jax: 0.10.0
libtpu: 0.0.40
codegen_flags: <defaults>
</compile_context>

<pallas_src>
import jax
import jax.numpy as jnp
from jax.experimental import pallas as pl
from jax.experimental.pallas import tpu as pltpu

N_OUT = 3        # (steer, gas, brake)
N_PAD = 128      # lane-dense padded output width


def _policy_kernel(x_ref, w_ref, b_ref, a_ref, c_ref, o_ref):
    """x:(B,D)  w:(D,Np)  b/a/c:(1,Np)  o:(B,Np).

    raw = x @ w + b  (columns 1..2 of w/b already pre-scaled by 0.5)
    o   = a * tanh(raw) + c
      col 0      : a=1.0, c=0.0            -> tanh(raw)            (steer)
      cols 1..2  : a=0.5, c=0.5            -> sigmoid(orig raw)    (gas, brake)
      cols 3..127: a=0.0, c=0.0, w=0, b=0  -> 0                    (padding)
    """
    x = x_ref[...].astype(jnp.float32)                      # in-kernel cast
    raw = jnp.dot(x, w_ref[...], preferred_element_type=jnp.float32)
    raw = raw + b_ref[...]
    t = jnp.tanh(raw)                                        # single EUP pass
    o_ref[...] = (a_ref[...] * t + c_ref[...]).astype(o_ref.dtype)


def prepare_policy_params(weight, bias):
    """One-time conversion of torch-layout params to kernel layout.

    weight : (3, input_size) float32 (torch nn.Linear layout)
    bias   : (3,)            float32
    returns (w_padded (D,128), b_padded (1,128), scale (1,128), offset (1,128))
    Columns 1..2 of w_padded / b_padded are pre-scaled by 0.5 so that
    sigmoid(raw) == 0.5 * tanh(raw_prescaled) + 0.5.
    """
    weight = jnp.asarray(weight, jnp.float32)
    bias = jnp.asarray(bias, jnp.float32)
    D = weight.shape[1]

    col_scale = jnp.array([1.0, 0.5, 0.5], jnp.float32)       # pre-scale
    w_p = jnp.zeros((D, N_PAD), jnp.float32).at[:, :N_OUT].set(weight.T * col_scale)
    b_p = jnp.zeros((1, N_PAD), jnp.float32).at[0, :N_OUT].set(bias * col_scale)

    a = jnp.zeros((1, N_PAD), jnp.float32).at[0, :N_OUT].set(
        jnp.array([1.0, 0.5, 0.5], jnp.float32))              # tanh scale
    c = jnp.zeros((1, N_PAD), jnp.float32).at[0, :N_OUT].set(
        jnp.array([0.0, 0.5, 0.5], jnp.float32))              # tanh offset
    return w_p, b_p, a, c


_VMEM_SPEC = pl.BlockSpec(memory_space=pltpu.MemorySpace.VMEM)


@jax.jit
def policy_net_forward(x, w_padded, b_padded, scale, offset):
    """Single-step forward.

    x : (B, input_size) any float dtype.
    Returns the lane-dense padded (B, 128) slab; use `extract_actions` once at
    the end of a rollout to get (B, 3).
    """
    B, _ = x.shape
    return pl.pallas_call(
        _policy_kernel,
        out_shape=jax.ShapeDtypeStruct((B, N_PAD), jnp.float32),
        # Grid-less call: every operand is a single full-array VMEM block.
        in_specs=[_VMEM_SPEC] * 5,
        out_specs=_VMEM_SPEC,
    )(x, w_padded, b_padded, scale, offset)


@jax.jit
def policy_net_forward_steps(xs, w_padded, b_padded, scale, offset):
    """Multi-step / multi-rollout forward in a single pallas_call.

    xs : (T, B, input_size). Grid iterates over T; the weight / bias /
    scale / offset BlockSpecs map every grid step to block (0, 0), so they
    stay VMEM-resident across all steps (one HBM->VMEM DMA total) and the
    per-call dispatch overhead is amortized over T.
    Returns (T, B, 128) padded outputs.
    """
    T, B, D = xs.shape
    return pl.pallas_call(
        _policy_kernel,
        out_shape=jax.ShapeDtypeStruct((T, B, N_PAD), jnp.float32),
        grid=(T,),
        in_specs=[
            pl.BlockSpec((pl.Squeezed(), B, D), lambda t: (t, 0, 0)),
            pl.BlockSpec((D, N_PAD), lambda t: (0, 0)),       # VMEM-resident
            pl.BlockSpec((1, N_PAD), lambda t: (0, 0)),
            pl.BlockSpec((1, N_PAD), lambda t: (0, 0)),
            pl.BlockSpec((1, N_PAD), lambda t: (0, 0)),
        ],
        out_specs=pl.BlockSpec((pl.Squeezed(), B, N_PAD), lambda t: (t, 0, 0)),
        # Keep this tiny op on one TensorCore (no cross-core sharding on v7x).
        compiler_params=pltpu.CompilerParams(
            dimension_semantics=("arbitrary",)),
    )(xs, w_padded, b_padded, scale, offset)


def extract_actions(out_padded):
    """One-time slice of the padded output back to (…, 3) = (steer, gas, brake).

    Call once at the end of a rollout, not on the per-step path.
    """
    return out_padded[..., :N_OUT]


def _reference_forward(x, weight, bias):
    raw = x.astype(jnp.float32) @ weight.T + bias
    steer = jnp.tanh(raw[:, 0:1])
    gas = jax.nn.sigmoid(raw[:, 1:2])
    brake = jax.nn.sigmoid(raw[:, 2:3])
    return jnp.concatenate([steer, gas, brake], axis=1)


if __name__ == "__main__":
    # Small shapes consistent with the controller: input = [z_t ; h_t]
    # with latent_dim=16, hidden_dim=32 -> input_size=48, batch=2.
    # (For CMA-ES population evaluation, batch all rollouts so B grows toward
    #  128 on v5e / 256 on v6e+v7x — the MXU pass costs the same.)
    B = 2
    T = 4
    latent_dim, hidden_dim = 16, 32
    input_size = latent_dim + hidden_dim

    key = jax.random.PRNGKey(0)
    kx, kxs, kw, kb = jax.random.split(key, 4)

    x = jax.random.normal(kx, (B, input_size), jnp.float32)
    xs = jax.random.normal(kxs, (T, B, input_size), jnp.float32)

    # Deterministic synthetic Linear(input_size, 3) parameters.
    bound = 1.0 / (input_size ** 0.5)
    weight = jax.random.uniform(kw, (N_OUT, input_size), jnp.float32,
                                minval=-bound, maxval=bound)
    bias = jax.random.uniform(kb, (N_OUT,), jnp.float32,
                              minval=-bound, maxval=bound)

    # One-time parameter prep (hoisted out of the per-step forward path).
    params = prepare_policy_params(weight, bias)
    params = jax.block_until_ready(params)
    w_p, b_p, a_p, c_p = params

    # --- single-step forward (grid-less) -----------------------------------
    out_p = policy_net_forward(x, w_p, b_p, a_p, c_p)
    out_p = jax.block_until_ready(out_p)
    actions = extract_actions(out_p)                 # one-time slice
    ref = _reference_forward(x, weight, bias)
    assert actions.shape == (B, N_OUT)
    assert jnp.allclose(actions, ref, atol=1e-5, rtol=1e-5), (actions, ref)
    # Padded lanes are exactly zero (a=c=0 there).
    assert jnp.all(out_p[:, N_OUT:] == 0.0)

    # --- multi-step forward (grid over T, weights VMEM-resident) -----------
    outs_p = policy_net_forward_steps(xs, w_p, b_p, a_p, c_p)
    outs_p = jax.block_until_ready(outs_p)
    acts_steps = extract_actions(outs_p)
    assert acts_steps.shape == (T, B, N_OUT)
    for t in range(T):
        ref_t = _reference_forward(xs[t], weight, bias)
        assert jnp.allclose(acts_steps[t], ref_t, atol=1e-5, rtol=1e-5), t

    print("KERNEL_OK")
</pallas_src>

<mosaic_0001>
module attributes {stable_mosaic.version = 11 : i64} {
  func.func @_policy_kernel(%arg0: memref<2x48xf32, #tpu.memory_space<vmem>>, %arg1: memref<48x128xf32, #tpu.memory_space<vmem>>, %arg2: memref<1x128xf32, #tpu.memory_space<vmem>>, %arg3: memref<1x128xf32, #tpu.memory_space<vmem>>, %arg4: memref<1x128xf32, #tpu.memory_space<vmem>>, %arg5: memref<2x128xf32, #tpu.memory_space<vmem>>) attributes {dimension_semantics = [], scalar_prefetch = 0 : i64, scratch_operands = 0 : i64, tpu.core_type = #tpu.core_type<tc>} {
    %c0 = arith.constant 0 : index
    %c0_0 = arith.constant 0 : index
    %0 = vector.load %arg0[%c0, %c0_0] : memref<2x48xf32, #tpu.memory_space<vmem>>, vector<2x48xf32>
    %c0_1 = arith.constant 0 : index
    %c0_2 = arith.constant 0 : index
    %1 = vector.load %arg1[%c0_1, %c0_2] : memref<48x128xf32, #tpu.memory_space<vmem>>, vector<48x128xf32>
    %cst = arith.constant dense<0.000000e+00> : vector<2x128xf32>
    %2 = tpu.matmul %0, %1, %cst {dimension_numbers = #tpu.dot_dimension_numbers<[1], [0], [0], [1], [0, 0, 1, 1], [], []>} : vector<2x48xf32>, vector<48x128xf32>, vector<2x128xf32> -> vector<2x128xf32>
    %c0_3 = arith.constant 0 : index
    %c0_4 = arith.constant 0 : index
    %3 = vector.load %arg2[%c0_3, %c0_4] : memref<1x128xf32, #tpu.memory_space<vmem>>, vector<1x128xf32>
    %4 = vector.broadcast %3 : vector<1x128xf32> to vector<2x128xf32>
    %5 = arith.addf %2, %4 : vector<2x128xf32>
    %6 = math.tanh %5 : vector<2x128xf32>
    %c0_5 = arith.constant 0 : index
    %c0_6 = arith.constant 0 : index
    %7 = vector.load %arg3[%c0_5, %c0_6] : memref<1x128xf32, #tpu.memory_space<vmem>>, vector<1x128xf32>
    %8 = vector.broadcast %7 : vector<1x128xf32> to vector<2x128xf32>
    %9 = arith.mulf %8, %6 : vector<2x128xf32>
    %c0_7 = arith.constant 0 : index
    %c0_8 = arith.constant 0 : index
    %10 = vector.load %arg4[%c0_7, %c0_8] : memref<1x128xf32, #tpu.memory_space<vmem>>, vector<1x128xf32>
    %11 = vector.broadcast %10 : vector<1x128xf32> to vector<2x128xf32>
    %12 = arith.addf %9, %11 : vector<2x128xf32>
    %c0_9 = arith.constant 0 : index
    %c0_10 = arith.constant 0 : index
    %13 = vector.load %arg5[%c0_9, %c0_10] : memref<2x128xf32, #tpu.memory_space<vmem>>, vector<2x128xf32>
    tpu.vector_store %arg5[%c0_9, %c0_10], %12 {strides = array<i32>} : memref<2x128xf32, #tpu.memory_space<vmem>>, vector<2x128xf32>,
    return
  }
}

</mosaic_0001>

<bundles_post_ra>
// kernel: policy_net_forward.1
= control target key start
LH: loop header
LB: loop body
LE: loop exit
PB: predicated region body
PF: predicated region fallthrough
CT: control target
= control target key end

     0   :  { %10 = vsyncpa [#allocation3], 0  ;;  %s258_s0 = inlined_call_operand.hbm [shape: f32[2,48], index: 0, kind: input, shape index: {}]   ;;  %s259_s1 = inlined_call_operand.hbm [shape: f32[48,128], index: 1, kind: input, shape index: {}]   ;;  %s260_s2 = inlined_call_operand.vmem [shape: f32[1,128], index: 2, kind: input, shape index: {}]   ;;  %s261_s3 = inlined_call_operand.vmem [shape: f32[1,128], index: 3, kind: input, shape index: {}]   ;;  %s262_s4 = inlined_call_operand.vmem [shape: f32[1,128], index: 4, kind: input, shape index: {}]   ;;  %s263_s5 = inlined_call_operand.hbm [shape: f32[2,128], index: 5, kind: output, shape index: {}]  }
   0x1   :  { %11 = vsyncpa [#allocation6], 0 }
   0x2   :  { %12 = vsyncpa [#allocation4], 0  ;;  %s18_s20 = sshll.u32 %s258_s0, 4  ;;  %s205_s21 = smov [#allocation2]   ;;  %s19_s20 = int_to_ptr.hbm [resolvable:$true] %s18_s20 }
   0x3   :  { %s20_s22 = sshll.u32 %s205_s21, 4  ;;  %s28_s25 = sshll.u32 %s259_s1, 4  ;;  %s21_s22 = int_to_ptr.vmem [resolvable:$true] %s20_s22  ;;  %s29_s25 = int_to_ptr.hbm [resolvable:$true] %s28_s25 }
   0x4   :  { %23 = dma.hbm_to_vmem [thread:$0]  %s19_s20, 32, %s21_s22, [#allocation3]  }
   0x5   :  { %s206_s26 = smov [#allocation5]   ;;  %s207_s28 = smov 128  }
   0x6   :  { %s30_s27 = sshll.u32 %s206_s26, 4  ;;  %s208_s29 = smov 8   ;;  %s31_s27 = int_to_ptr.vmem [resolvable:$true] %s30_s27 }
   0x7   :  { %36 = dma.hbm_to_vmem [thread:$0]  %s29_s25, 768, %s31_s27, [#allocation6], %s207_s28, %s207_s28, %s208_s29  }
   0x8   :  { %199 = dma.done.wait [#allocation3], 32  }
   0x9   :  { %200 = vsyncadd [#allocation3], 4294967264 }
   0xa   :  { %201 = dma.done.wait [#allocation6], 768  }
   0xb   :  { %202 = vsyncadd [#allocation6], 4294966528  ;;  %v57_v0 = vld [vmem:[#allocation5 + $0x28] sm:$0xff]  ;;  %v56_v1 = vld [vmem:[#allocation5 + $0x20] sm:$0xff]  ;;  %vm62_vm0 = vcmask 392192   ;;  %s209_s9 = smov [#allocation7]  }
   0xc   :  { %76 = vmatpush.msra.mxu0 %v57_v0  ;;  %v55_v2 = vld [vmem:[#allocation5 + $0x18] sm:$0xff]  ;;  %v54_v3 = vld [vmem:[#allocation5 + $0x10] sm:$0xff]  ;;  %v53_v4 = vld [vmem:[#allocation5 + $0x8] sm:$0xff]  ;;  %s103_s10 = sshll.u32 %s209_s9, 4  ;;  %s105_s13 = sshll.u32 %s263_s5, 4  ;;  %s104_s10 = int_to_ptr.vmem [resolvable:$true] %s103_s10  ;;  %s106_s13 = int_to_ptr.hbm [resolvable:$true] %s105_s13 }
   0xd   :  { %v52_v5 = vld [vmem:[#allocation5] sm:$0xff]  ;;  %v51_v6 = vld [vmem:[#allocation2] sm:$0x3] }
   0xe   :  { %77 = vmatpush.msra.mxu0 %v56_v1  ;;  %v122_v7 = vld [vmem:[%s260_s2] ss:$0 sm:$0xff] }
   0xf   :  { %v123_v10 = vld [vmem:[%s261_s3] ss:$0 sm:$0xff] }
  0x10   :  { %78 = vmatpush.msra.mxu0 %v55_v2  ;;  %v124_v11 = vld [vmem:[%s262_s4] ss:$0 sm:$0xff] }
  0x12   :  { %79 = vmatpush.msra.mxu0 %v54_v3 }
  0x14   :  { %80 = vmatpush.msra.mxu0 %v53_v4 }
  0x16   :  { %81 = vmatpush.msra.mxu0 %v52_v5 }
  0x17   :  { %116 = vmatmul.msk.f32.vlgmr.msra.gmra.mxu0 %vm62_vm0, %v51_v6 }
  0x94   :  { %v83_v8 = vpop.f32.mrf.mxu0 }
  0x95   :  { %v84_v9 = vadd.f32 %v122_v7, %v83_v8 }
  0x97   :  { %125 = vtanh.f32 %v84_v9 }
  0x9d   :  { %v126_v12 = vpop.eup %125 }
  0x9e   :  { %v91_v13 = vmul.f32 %v126_v12, %v123_v10 }
  0xa0   :  { %v96_v14 = vadd.f32 %v124_v11, %v91_v13 }
  0xa2   :  { %97 = vst [vmem:[#allocation7] sm:$0x3] %v96_v14 }
  0xa3   :  { %108 = dma.vmem_to_hbm [thread:$0]  %s104_s10, 32, %s106_s13, [#allocation4]  }
  0xa4   :  { %203 = dma.done.wait [#allocation4], 32  }
  0xa5   :  { %204 = vsyncadd [#allocation4], 4294967264 }
  0xa6   :  { %113 = vsyncpa [#allocation3], 1 }
  0xa7   :  { %114 = vsyncpa [#allocation6], 1 }
  0xa8   :  { %115 = vsyncpa [#allocation4], 1 }

</bundles_post_ra>
